<compile_context>
chip_gen: v6e
topology: v6e:2x2x1
jax: 0.10.0
libtpu: 0.0.40
codegen_flags: <defaults>
</compile_context>

<pallas_src>
import jax
import jax.numpy as jnp
from jax.experimental import pallas as pl
from jax.experimental.pallas import tpu as pltpu


def _fused_gnn_kernel(a_ref, dinv_ref, x_ref,
                      w1l_ref, w1r_ref, b1_ref,
                      w2l_ref, w2r_ref, b2_ref,
                      out_ref, h_ref):
    # Adjacency counts stored as bf16 (exact small integers); upcast once for
    # exact f32 MXU accumulation.
    a = a_ref[...].astype(jnp.float32)      # [N, N]
    dinv = dinv_ref[...]                    # [N, 1] f32, 1 / clip(in_degree, 1)
    x = x_ref[...]                          # [N, D_in] f32

    # ---- conv1 (D_in=16 -> H=32): aggregate first (contraction width D_in) ----
    agg1 = jnp.dot(a, x, preferred_element_type=jnp.float32) * dinv
    h = (jnp.dot(agg1, w1l_ref[...], preferred_element_type=jnp.float32)
         + b1_ref[...]
         + jnp.dot(x, w1r_ref[...], preferred_element_type=jnp.float32))
    h_ref[...] = jnp.maximum(h, 0.0)        # ReLU; h stays resident in VMEM scratch

    # ---- conv2 (H=32 -> D_out=8): project first, then aggregate ------------
    # mean(A @ h) @ W2l == (A @ (h @ W2l)) * dinv  (dinv is a per-row / diagonal
    # scale, so it commutes with the right-multiplication by W2l).
    h = h_ref[...]
    hw2l = jnp.dot(h, w2l_ref[...], preferred_element_type=jnp.float32)
    out = (jnp.dot(a, hw2l, preferred_element_type=jnp.float32) * dinv
           + b2_ref[...]
           + jnp.dot(h, w2r_ref[...], preferred_element_type=jnp.float32))
    out_ref[...] = out.astype(out_ref.dtype)


def _full_spec(shape):
    # Single full-array block (grid has one step); fine for these tiny shapes.
    return pl.BlockSpec(shape, lambda i: (0, 0))


def course_recommendation_gnn_forward(params, x, edge_index):
    n = x.shape[0]
    hidden_dim = params["w1_l"].shape[1]
    output_dim = params["w2_l"].shape[1]

    # Raw adjacency counts: A[i, j] = #edges j -> i (duplicates counted, same
    # as PyG mean aggregation). Stored bf16: counts are exact small integers,
    # and it is the only O(N^2) operand, so this halves its HBM/DMA footprint.
    src, dst = edge_index[0], edge_index[1]
    a_counts = (jnp.zeros((n, n), jnp.float32)
                .at[dst, src].add(1.0)
                .astype(jnp.bfloat16))
    # In-degree reciprocal (clip to 1 matches PyG's zero output for isolated nodes).
    deg = jnp.zeros((n,), jnp.float32).at[dst].add(1.0)
    deg_inv = (1.0 / jnp.clip(deg, 1.0, None)).reshape(n, 1)

    return pl.pallas_call(
        _fused_gnn_kernel,
        out_shape=jax.ShapeDtypeStruct((n, output_dim), jnp.float32),
        grid=(1,),
        in_specs=[
            _full_spec((n, n)),                   # adjacency counts (bf16)
            _full_spec((n, 1)),                   # deg_inv
            _full_spec(x.shape),                  # x
            _full_spec(params["w1_l"].shape),
            _full_spec(params["w1_r"].shape),
            _full_spec(params["b1_l"].shape),
            _full_spec(params["w2_l"].shape),
            _full_spec(params["w2_r"].shape),
            _full_spec(params["b2_l"].shape),
        ],
        out_specs=_full_spec((n, output_dim)),
        scratch_shapes=[pltpu.VMEM((n, hidden_dim), jnp.float32)],  # h between layers
        compiler_params=pltpu.CompilerParams(
            dimension_semantics=("arbitrary",)),
    )(a_counts, deg_inv, x,
      params["w1_l"], params["w1_r"], params["b1_l"],
      params["w2_l"], params["w2_r"], params["b2_l"])


def init_params(key, input_dim, hidden_dim, output_dim):
    ks = jax.random.split(key, 6)
    s1 = 1.0 / jnp.sqrt(input_dim)
    s2 = 1.0 / jnp.sqrt(hidden_dim)
    return {
        # conv1: lin_l (with bias) applied to aggregated neighbors, lin_r (no bias) to self
        "w1_l": jax.random.uniform(ks[0], (input_dim, hidden_dim), jnp.float32, -s1, s1),
        "w1_r": jax.random.uniform(ks[1], (input_dim, hidden_dim), jnp.float32, -s1, s1),
        "b1_l": jax.random.uniform(ks[2], (1, hidden_dim), jnp.float32, -s1, s1),
        # conv2
        "w2_l": jax.random.uniform(ks[3], (hidden_dim, output_dim), jnp.float32, -s2, s2),
        "w2_r": jax.random.uniform(ks[4], (hidden_dim, output_dim), jnp.float32, -s2, s2),
        "b2_l": jax.random.uniform(ks[5], (1, output_dim), jnp.float32, -s2, s2),
    }


def _reference_forward(params, x, edge_index):
    n = x.shape[0]
    src, dst = edge_index[0], edge_index[1]
    a = jnp.zeros((n, n), jnp.float32).at[dst, src].add(1.0)
    deg = jnp.clip(jnp.sum(a, axis=1, keepdims=True), 1.0, None)
    a_norm = a / deg
    h = jnp.maximum(a_norm @ x @ params["w1_l"] + params["b1_l"] + x @ params["w1_r"], 0.0)
    return a_norm @ h @ params["w2_l"] + params["b2_l"] + h @ params["w2_r"]


if __name__ == "__main__":
    N, E = 64, 256
    INPUT_DIM, HIDDEN_DIM, OUTPUT_DIM = 16, 32, 8

    key = jax.random.PRNGKey(0)
    k_x, k_src, k_dst, k_params = jax.random.split(key, 4)

    x = jax.random.normal(k_x, (N, INPUT_DIM), jnp.float32)
    edge_index = jnp.stack(
        [
            jax.random.randint(k_src, (E,), 0, N),
            jax.random.randint(k_dst, (E,), 0, N),
        ],
        axis=0,
    )  # [2, E], int32

    params = init_params(k_params, INPUT_DIM, HIDDEN_DIM, OUTPUT_DIM)

    out = course_recommendation_gnn_forward(params, x, edge_index)
    out = jax.block_until_ready(out)

    ref = _reference_forward(params, x, edge_index)
    assert out.shape == (N, OUTPUT_DIM)
    assert jnp.allclose(out, ref, atol=1e-4, rtol=1e-4), float(jnp.max(jnp.abs(out - ref)))

    print("KERNEL_OK")
</pallas_src>

<mosaic_0001>
module attributes {stable_mosaic.version = 11 : i64} {
  func.func @_fused_gnn_kernel(%arg0: i32, %arg1: memref<64x64xbf16, #tpu.memory_space<vmem>>, %arg2: memref<64x1xf32, #tpu.memory_space<vmem>>, %arg3: memref<64x16xf32, #tpu.memory_space<vmem>>, %arg4: memref<16x32xf32, #tpu.memory_space<vmem>>, %arg5: memref<16x32xf32, #tpu.memory_space<vmem>>, %arg6: memref<1x32xf32, #tpu.memory_space<vmem>>, %arg7: memref<32x8xf32, #tpu.memory_space<vmem>>, %arg8: memref<32x8xf32, #tpu.memory_space<vmem>>, %arg9: memref<1x8xf32, #tpu.memory_space<vmem>>, %arg10: memref<64x8xf32, #tpu.memory_space<vmem>>, %arg11: memref<64x32xf32, #tpu.memory_space<vmem>>) attributes {dimension_semantics = [#tpu.dimension_semantics<arbitrary>], iteration_bounds = array<i64: 1>, scalar_prefetch = 0 : i64, scratch_operands = 1 : i64, tpu.core_type = #tpu.core_type<tc>, window_params = [{pipeline_mode = #tpu.pipeline_mode<synchronous>, transform_indices = @transform_0, window_bounds = array<i64: 64, 64>}, {pipeline_mode = #tpu.pipeline_mode<synchronous>, transform_indices = @transform_1, window_bounds = array<i64: 64, 1>}, {pipeline_mode = #tpu.pipeline_mode<synchronous>, transform_indices = @transform_2, window_bounds = array<i64: 64, 16>}, {pipeline_mode = #tpu.pipeline_mode<synchronous>, transform_indices = @transform_3, window_bounds = array<i64: 16, 32>}, {pipeline_mode = #tpu.pipeline_mode<synchronous>, transform_indices = @transform_4, window_bounds = array<i64: 16, 32>}, {pipeline_mode = #tpu.pipeline_mode<synchronous>, transform_indices = @transform_5, window_bounds = array<i64: 1, 32>}, {pipeline_mode = #tpu.pipeline_mode<synchronous>, transform_indices = @transform_6, window_bounds = array<i64: 32, 8>}, {pipeline_mode = #tpu.pipeline_mode<synchronous>, transform_indices = @transform_7, window_bounds = array<i64: 32, 8>}, {pipeline_mode = #tpu.pipeline_mode<synchronous>, transform_indices = @transform_8, window_bounds = array<i64: 1, 8>}, {pipeline_mode = #tpu.pipeline_mode<synchronous>, transform_indices = @transform_9, window_bounds = array<i64: 64, 8>}]} {
    %c0 = arith.constant 0 : index
    %c0_0 = arith.constant 0 : index
    %0 = vector.load %arg1[%c0, %c0_0] : memref<64x64xbf16, #tpu.memory_space<vmem>>, vector<64x64xbf16>
    %1 = arith.extf %0 : vector<64x64xbf16> to vector<64x64xf32>
    %c0_1 = arith.constant 0 : index
    %c0_2 = arith.constant 0 : index
    %2 = vector.load %arg2[%c0_1, %c0_2] : memref<64x1xf32, #tpu.memory_space<vmem>>, vector<64x1xf32>
    %c0_3 = arith.constant 0 : index
    %c0_4 = arith.constant 0 : index
    %3 = vector.load %arg3[%c0_3, %c0_4] : memref<64x16xf32, #tpu.memory_space<vmem>>, vector<64x16xf32>
    %cst = arith.constant dense<0.000000e+00> : vector<64x16xf32>
    %4 = tpu.matmul %1, %3, %cst {dimension_numbers = #tpu.dot_dimension_numbers<[1], [0], [0], [1], [0, 0, 1, 1], [], []>} : vector<64x64xf32>, vector<64x16xf32>, vector<64x16xf32> -> vector<64x16xf32>
    %5 = vector.broadcast %2 : vector<64x1xf32> to vector<64x16xf32>
    %6 = arith.mulf %4, %5 : vector<64x16xf32>
    %c0_5 = arith.constant 0 : index
    %c0_6 = arith.constant 0 : index
    %7 = vector.load %arg4[%c0_5, %c0_6] : memref<16x32xf32, #tpu.memory_space<vmem>>, vector<16x32xf32>
    %cst_7 = arith.constant dense<0.000000e+00> : vector<64x32xf32>
    %8 = tpu.matmul %6, %7, %cst_7 {dimension_numbers = #tpu.dot_dimension_numbers<[1], [0], [0], [1], [0, 0, 1, 1], [], []>} : vector<64x16xf32>, vector<16x32xf32>, vector<64x32xf32> -> vector<64x32xf32>
    %c0_8 = arith.constant 0 : index
    %c0_9 = arith.constant 0 : index
    %9 = vector.load %arg6[%c0_8, %c0_9] : memref<1x32xf32, #tpu.memory_space<vmem>>, vector<1x32xf32>
    %10 = vector.broadcast %9 : vector<1x32xf32> to vector<64x32xf32>
    %11 = arith.addf %8, %10 : vector<64x32xf32>
    %c0_10 = arith.constant 0 : index
    %c0_11 = arith.constant 0 : index
    %12 = vector.load %arg5[%c0_10, %c0_11] : memref<16x32xf32, #tpu.memory_space<vmem>>, vector<16x32xf32>
    %cst_12 = arith.constant dense<0.000000e+00> : vector<64x32xf32>
    %13 = tpu.matmul %3, %12, %cst_12 {dimension_numbers = #tpu.dot_dimension_numbers<[1], [0], [0], [1], [0, 0, 1, 1], [], []>} : vector<64x16xf32>, vector<16x32xf32>, vector<64x32xf32> -> vector<64x32xf32>
    %14 = arith.addf %11, %13 : vector<64x32xf32>
    %cst_13 = arith.constant 0.000000e+00 : f32
    %15 = vector.broadcast %cst_13 : f32 to vector<64x32xf32>
    %16 = arith.maximumf %14, %15 : vector<64x32xf32>
    %c0_14 = arith.constant 0 : index
    %c0_15 = arith.constant 0 : index
    %17 = vector.load %arg11[%c0_14, %c0_15] : memref<64x32xf32, #tpu.memory_space<vmem>>, vector<64x32xf32>
    tpu.vector_store %arg11[%c0_14, %c0_15], %16 {strides = array<i32>} : memref<64x32xf32, #tpu.memory_space<vmem>>, vector<64x32xf32>,
    %c0_16 = arith.constant 0 : index
    %c0_17 = arith.constant 0 : index
    %18 = vector.load %arg11[%c0_16, %c0_17] : memref<64x32xf32, #tpu.memory_space<vmem>>, vector<64x32xf32>
    %c0_18 = arith.constant 0 : index
    %c0_19 = arith.constant 0 : index
    %19 = vector.load %arg7[%c0_18, %c0_19] : memref<32x8xf32, #tpu.memory_space<vmem>>, vector<32x8xf32>
    %cst_20 = arith.constant dense<0.000000e+00> : vector<64x8xf32>
    %20 = tpu.matmul %18, %19, %cst_20 {dimension_numbers = #tpu.dot_dimension_numbers<[1], [0], [0], [1], [0, 0, 1, 1], [], []>} : vector<64x32xf32>, vector<32x8xf32>, vector<64x8xf32> -> vector<64x8xf32>
    %cst_21 = arith.constant dense<0.000000e+00> : vector<64x8xf32>
    %21 = tpu.matmul %1, %20, %cst_21 {dimension_numbers = #tpu.dot_dimension_numbers<[1], [0], [0], [1], [0, 0, 1, 1], [], []>} : vector<64x64xf32>, vector<64x8xf32>, vector<64x8xf32> -> vector<64x8xf32>
    %22 = vector.broadcast %2 : vector<64x1xf32> to vector<64x8xf32>
    %23 = arith.mulf %21, %22 : vector<64x8xf32>
    %c0_22 = arith.constant 0 : index
    %c0_23 = arith.constant 0 : index
    %24 = vector.load %arg9[%c0_22, %c0_23] : memref<1x8xf32, #tpu.memory_space<vmem>>, vector<1x8xf32>
    %25 = vector.broadcast %24 : vector<1x8xf32> to vector<64x8xf32>
    %26 = arith.addf %23, %25 : vector<64x8xf32>
    %c0_24 = arith.constant 0 : index
    %c0_25 = arith.constant 0 : index
    %27 = vector.load %arg8[%c0_24, %c0_25] : memref<32x8xf32, #tpu.memory_space<vmem>>, vector<32x8xf32>
    %cst_26 = arith.constant dense<0.000000e+00> : vector<64x8xf32>
    %28 = tpu.matmul %18, %27, %cst_26 {dimension_numbers = #tpu.dot_dimension_numbers<[1], [0], [0], [1], [0, 0, 1, 1], [], []>} : vector<64x32xf32>, vector<32x8xf32>, vector<64x8xf32> -> vector<64x8xf32>
    %29 = arith.addf %26, %28 : vector<64x8xf32>
    %c0_27 = arith.constant 0 : index
    %c0_28 = arith.constant 0 : index
    %30 = vector.load %arg10[%c0_27, %c0_28] : memref<64x8xf32, #tpu.memory_space<vmem>>, vector<64x8xf32>
    tpu.vector_store %arg10[%c0_27, %c0_28], %29 {strides = array<i32>} : memref<64x8xf32, #tpu.memory_space<vmem>>, vector<64x8xf32>,
    return
  }
  func.func @transform_0(%arg0: i32) -> (i32, i32) {
    %c0_i32 = arith.constant 0 : i32
    %c0_i32_0 = arith.constant 0 : i32
    %c0_i32_1 = arith.constant 0 : i32
    return %c0_i32, %c0_i32_0 : i32, i32
  }
  func.func @transform_1(%arg0: i32) -> (i32, i32) {
    %c0_i32 = arith.constant 0 : i32
    %c0_i32_0 = arith.constant 0 : i32
    %c0_i32_1 = arith.constant 0 : i32
    return %c0_i32, %c0_i32_0 : i32, i32
  }
  func.func @transform_2(%arg0: i32) -> (i32, i32) {
    %c0_i32 = arith.constant 0 : i32
    %c0_i32_0 = arith.constant 0 : i32
    %c0_i32_1 = arith.constant 0 : i32
    return %c0_i32, %c0_i32_0 : i32, i32
  }
  func.func @transform_3(%arg0: i32) -> (i32, i32) {
    %c0_i32 = arith.constant 0 : i32
    %c0_i32_0 = arith.constant 0 : i32
    %c0_i32_1 = arith.constant 0 : i32
    return %c0_i32, %c0_i32_0 : i32, i32
  }
  func.func @transform_4(%arg0: i32) -> (i32, i32) {
    %c0_i32 = arith.constant 0 : i32
    %c0_i32_0 = arith.constant 0 : i32
    %c0_i32_1 = arith.constant 0 : i32
    return %c0_i32, %c0_i32_0 : i32, i32
  }
  func.func @transform_5(%arg0: i32) -> (i32, i32) {
    %c0_i32 = arith.constant 0 : i32
    %c0_i32_0 = arith.constant 0 : i32
    %c0_i32_1 = arith.constant 0 : i32
    return %c0_i32, %c0_i32_0 : i32, i32
  }
  func.func @transform_6(%arg0: i32) -> (i32, i32) {
    %c0_i32 = arith.constant 0 : i32
    %c0_i32_0 = arith.constant 0 : i32
    %c0_i32_1 = arith.constant 0 : i32
    return %c0_i32, %c0_i32_0 : i32, i32
  }
  func.func @transform_7(%arg0: i32) -> (i32, i32) {
    %c0_i32 = arith.constant 0 : i32
    %c0_i32_0 = arith.constant 0 : i32
    %c0_i32_1 = arith.constant 0 : i32
    return %c0_i32, %c0_i32_0 : i32, i32
  }
  func.func @transform_8(%arg0: i32) -> (i32, i32) {
    %c0_i32 = arith.constant 0 : i32
    %c0_i32_0 = arith.constant 0 : i32
    %c0_i32_1 = arith.constant 0 : i32
    return %c0_i32, %c0_i32_0 : i32, i32
  }
  func.func @transform_9(%arg0: i32) -> (i32, i32) {
    %c0_i32 = arith.constant 0 : i32
    %c0_i32_0 = arith.constant 0 : i32
    %c0_i32_1 = arith.constant 0 : i32
    return %c0_i32, %c0_i32_0 : i32, i32
  }
}

</mosaic_0001>

<bundles_post_ra>
// kernel: tpu_custom_call.1
= control target key start
LH: loop header
LB: loop body
LE: loop exit
PB: predicated region body
PF: predicated region fallthrough
CT: control target
= control target key end

     0   :  { %v1220_v2 = vmov 0   ;;  %vm64_vm0 = vcmask 523264   ;;  %vm251_vm1 = vcmask 130048   ;;  %vm528_vm2 = vcmask 261120   ;;  %s1587_s2 = inlined_call_operand.vmem [shape: f32[64,16], index: 2, kind: input, shape index: {}]   ;;  %s1588_s0 = inlined_call_operand.vmem [shape: bf16[64,64], index: 0, kind: input, shape index: {}]   ;;  %s1589_s1 = inlined_call_operand.vmem [shape: f32[64,1], index: 1, kind: input, shape index: {}]   ;;  %s1590_s3 = inlined_call_operand.vmem [shape: f32[16,32], index: 3, kind: input, shape index: {}]   ;;  %s1591_s4 = inlined_call_operand.vmem [shape: f32[16,32], index: 4, kind: input, shape index: {}]   ;;  %s1592_s6 = inlined_call_operand.vmem [shape: f32[32,8], index: 6, kind: input, shape index: {}]   ;;  %s1593_s7 = inlined_call_operand.vmem [shape: f32[32,8], index: 7, kind: input, shape index: {}]   ;;  %s1594_s5 = inlined_call_operand.vmem [shape: f32[1,32], index: 5, kind: input, shape index: {}]   ;;  %s1595_s8 = inlined_call_operand.vmem [shape: f32[1,8], index: 8, kind: input, shape index: {}]   ;;  %s1596_s9 = inlined_call_operand.vmem [shape: f32[64,8], index: 9, kind: output, shape index: {}]  }
   0x1   :  { %v1274_v0 = vld [vmem:[%s1587_s2 + $0x38] sm:$0xff]  ;;  %v1279_v1 = vld [vmem:[%s1587_s2 + $0x30] sm:$0xff]  ;;  %1218 = vset.pattern.permute.xlu0 %v1220_v2  ;;  %1219 = vset.pattern.permute.xlu1 %v1220_v2  ;;  %v1286_v3 = vld [vmem:[%s1587_s2 + $0x28] sm:$0xff]  ;;  %vm923_vm3 = vcmask 64512  }
   0x2   :  { %1081 = vmatprep.subr.mxu0 %v1274_v0  ;;  %v1291_v4 = vld [vmem:[%s1588_s0] sm:$0xff]   ;;  %v50_v8 = vld [vmem:[%s1589_s1 + $0x10] sm:$0xff]  ;;  %v1315_v9 = vld [vmem:[%s1587_s2 + $0x18] sm:$0xff] }
   0x3   :  { %1082 = vmatpush3.msra.mxu0 %v1274_v0  ;;  %v988_v5 = vunpack.c.l.bf16 %v1291_v4  ;;  %v1299_v6 = vld [vmem:[%s1587_s2 + $0x20] sm:$0xff]  ;;  %206 = vperm.xlu1 %1219, %v50_v8   ;;  %v49_v10 = vld [vmem:[%s1589_s1 + $0x8] sm:$0xff]  ;;  %v1325_v11 = vld [vmem:[%s1587_s2 + $0x10] sm:$0xff]  ;;  %v989_v18 = vunpack.c.h.bf16 %v1291_v4 }
   0x4   :  { %1083 = vmatprep.subr.mxu0 %v1279_v1  ;;  %v48_v7 = vld [vmem:[%s1589_s1] sm:$0xff]  ;;  %v51_v12 = vld [vmem:[%s1589_s1 + $0x18] sm:$0xff]  ;;  %v1335_v13 = vld [vmem:[%s1587_s2 + $0x8] sm:$0xff] }
   0x5   :  { %1084 = vmatpush3.msra.mxu0 %v1279_v1  ;;  %1097 = vmatprep.mubr.msk.f32.mxu0 %vm64_vm0, %v988_v5  ;;  %v1341_v14 = vld [vmem:[%s1588_s0 + $0x8] sm:$0xff]   ;;  %v52_v15 = vld [vmem:[%s1589_s1 + $0x20] sm:$0xff]  ;;  %v1363_v20 = vld [vmem:[%s1588_s0 + $0x10] sm:$0xff]  }
   0x6   :  { %1085 = vmatprep.subr.mxu0 %v1286_v3  ;;  %196 = vperm.xlu0 %1218, %v48_v7   ;;  %v1350_v16 = vld [vmem:[%s1587_s2] sm:$0xff]  ;;  %v53_v17 = vld [vmem:[%s1589_s1 + $0x28] sm:$0xff]  ;;  %v992_v19 = vunpack.c.l.bf16 %v1341_v14  ;;  %v54_v21 = vld [vmem:[%s1589_s1 + $0x30] sm:$0xff]  ;;  %v993_v23 = vunpack.c.h.bf16 %v1341_v14  ;;  %v996_v24 = vunpack.c.l.bf16 %v1363_v20  ;;  %v997_v26 = vunpack.c.h.bf16 %v1363_v20 }
   0x7   :  { %1086 = vmatpush3.msra.mxu0 %v1286_v3  ;;  %211 = vperm.xlu1 %1219, %v51_v12   ;;  %v55_v22 = vld [vmem:[%s1589_s1 + $0x38] sm:$0xff]  ;;  %v243_v29 = vld [vmem:[%s1590_s3 + $0x8] sm:$0xff]  ;;  %v242_v30 = vld [vmem:[%s1590_s3] sm:$0xff] }
   0x8   :  { %1087 = vmatprep.subr.mxu0 %v1299_v6  ;;  %v1383_v25 = vld [vmem:[%s1588_s0 + $0x18] sm:$0xff]   ;;  %1109 = vmatprep.subr.mxu1 %v243_v29  ;;  %v382_v31 = vld [vmem:[%s1591_s4 + $0x8] sm:$0xff]  ;;  %v381_v41 = vld [vmem:[%s1591_s4] sm:$0xff] }
   0x9   :  { %1088 = vmatpush3.msra.mxu0 %v1299_v6  ;;  %v1000_v27 = vunpack.c.l.bf16 %v1383_v25  ;;  %v1001_v28 = vunpack.c.h.bf16 %v1383_v25  ;;  %1110 = vmatpush3.msra.mxu1 %v243_v29  ;;  %v548_v57 = vld [vmem:[%s1592_s6 + $0x18] sm:$0xff]  ;;  %v547_v58 = vld [vmem:[%s1592_s6 + $0x10] sm:$0xff]  ;;  %v546_v59 = vld [vmem:[%s1592_s6 + $0x8] sm:$0xff] }
   0xa   :  { %1089 = vmatprep.subr.mxu0 %v1315_v9  ;;  %201 = vperm.xlu0 %1218, %v49_v10   ;;  %v545_v60 = vld [vmem:[%s1592_s6] sm:$0xff]  ;;  %v1481_v61 = vld [vmem:[%s1593_s7 + $0x18] sm:$0xff] }
   0xb   :  { %1090 = vmatpush3.msra.mxu0 %v1315_v9  ;;  %221 = vperm.xlu1 %1219, %v53_v17  }
   0xc   :  { %1091 = vmatprep.subr.mxu0 %v1325_v11  ;;  %1111 = vmatprep.subr.mxu1 %v242_v30 }
   0xd   :  { %1092 = vmatpush3.msra.mxu0 %v1325_v11  ;;  %1112 = vmatpush3.msra.mxu1 %v242_v30 }
   0xe   :  { %1093 = vmatprep.subr.mxu0 %v1335_v13  ;;  %216 = vperm.xlu0 %1218, %v52_v15  }
   0xf   :  { %1094 = vmatpush3.msra.mxu0 %v1335_v13  ;;  %231 = vperm.xlu1 %1219, %v55_v22  }
  0x10   :  { %1095 = vmatprep.subr.mxu0 %v1350_v16  ;;  %1125 = vmatprep.subr.mxu1 %v382_v31 }
  0x11   :  { %1096 = vmatpush3.msra.mxu0 %v1350_v16 }
  0x12   :  { %1098 = vmatmul.mubr.msk.f32.vlgmr.msra.gmra.mxu0 %vm64_vm0, %v989_v18  ;;  %226 = vperm.xlu0 %1218, %v54_v21  }
  0x13   :  { %1100 = vmatprep.mubr.msk.f32.mxu0 %vm64_vm0, %v992_v19  ;;  %1141 = vmatprep.subr.mxu0 %v548_v57 }
  0x14   :  { %1142 = vmatpush3.msra.mxu0 %v548_v57 }
  0x15   :  { %1143 = vmatprep.subr.mxu0 %v547_v58 }
  0x16   :  { %1101 = vmatmul.mubr.msk.f32.gmra.mxu0 %vm64_vm0, %v993_v23 }
  0x17   :  { %1103 = vmatprep.mubr.msk.f32.mxu0 %vm64_vm0, %v996_v24  ;;  %1144 = vmatpush3.msra.mxu0 %v547_v58 }
  0x18   :  { %1145 = vmatprep.subr.mxu0 %v546_v59 }
  0x19   :  { %1146 = vmatpush3.msra.mxu0 %v546_v59  ;;  %v808_v59 = vld [vmem:[%s1593_s7 + $0x10] sm:$0xff] }
  0x1a   :  { %1104 = vmatmul.mubr.msk.f32.gmra.mxu0 %vm64_vm0, %v997_v26  ;;  %1147 = vmatprep.subr.mxu0 %v545_v60 }
  0x1b   :  { %1106 = vmatprep.mubr.msk.f32.mxu0 %vm64_vm0, %v1000_v27  ;;  %1148 = vmatpush3.msra.mxu0 %v545_v60 }
  0x1c   :  { %1189 = vmatprep.subr.mxu0 %v1481_v61 }
  0x1e   :  { %1107 = vmatmul.mubr.msk.f32.gmra.mxu0 %vm64_vm0, %v1001_v28 }
  0x7e   :  { %v1414_v33 = vpop.permute.xlu1 %206 }
  0x81   :  { %v1412_v32 = vpop.permute.xlu0 %196 }
  0x82   :  { %v1418_v37 = vpop.permute.xlu1 %211 }
  0x85   :  { %v1416_v35 = vpop.permute.xlu0 %201 }
  0x86   :  { %v1431_v47 = vpop.permute.xlu1 %221 }
  0x89   :  { %v1428_v44 = vpop.permute.xlu0 %216 }
  0x8a   :  { %v1441_v54 = vpop.permute.xlu1 %231 }
  0x8d   :  { %v1438_v52 = vpop.permute.xlu0 %226 }
  0xd2   :  { %v1099_v34 = vpop.f32.mrf.mxu0 }
  0xd3   :  { %v235_v39 = vmul.f32 %v1099_v34, %v1416_v35 }
  0xd4   :  { %v155_v36 = vpop.f32.mrf.mxu0 }
  0xd5   :  { %v234_v38 = vmul.f32 %v1412_v32, %v155_v36 }
  0xd6   :  { %v1102_v40 = vpop.f32.mrf.mxu0 }
  0xd7   :  { %1113 = vmatprep.mubr.msk.f32.mxu1 %vm251_vm1, %v234_v38  ;;  %v237_v45 = vmul.f32 %v1102_v40, %v1418_v37 }
  0xd8   :  { %v165_v42 = vpop.f32.mrf.mxu0  ;;  %1114 = vmatmul.mubr.msk.f32.vlgmr.msra.gmra.mxu1 %vm251_vm1, %v235_v39 }
  0xd9   :  { %v236_v43 = vmul.f32 %v1414_v33, %v165_v42  ;;  %1126 = vmatpush3.msra.mxu1 %v382_v31 }
  0xda   :  { %v1105_v46 = vpop.f32.mrf.mxu0  ;;  %1127 = vmatprep.subr.mxu1 %v381_v41 }
  0xdb   :  { %1116 = vmatprep.mubr.msk.f32.mxu1 %vm251_vm1, %v236_v43  ;;  %1128 = vmatpush3.msra.mxu1 %v381_v41  ;;  %v239_v50 = vmul.f32 %v1105_v46, %v1431_v47 }
  0xdc   :  { %v175_v48 = vpop.f32.mrf.mxu0  ;;  %1117 = vmatmul.mubr.msk.f32.gmra.mxu1 %vm251_vm1, %v237_v45 }
  0xdd   :  { %v238_v49 = vmul.f32 %v1428_v44, %v175_v48 }
  0xde   :  { %v1108_v51 = vpop.f32.mrf.mxu0 }
  0xdf   :  { %1119 = vmatprep.mubr.msk.f32.mxu1 %vm251_vm1, %v238_v49  ;;  %v241_v56 = vmul.f32 %v1108_v51, %v1441_v54 }
  0xe0   :  { %v185_v53 = vpop.f32.mrf.mxu0  ;;  %1120 = vmatmul.mubr.msk.f32.gmra.mxu1 %vm251_vm1, %v239_v50 }
  0xe1   :  { %v240_v55 = vmul.f32 %v1438_v52, %v185_v53 }
  0xe3   :  { %1122 = vmatprep.mubr.msk.f32.mxu1 %vm251_vm1, %v240_v55 }
  0xe4   :  { %1123 = vmatmul.mubr.msk.f32.gmra.mxu1 %vm251_vm1, %v241_v56 }
  0xe5   :  { %1129 = vmatprep.mubr.msk.f32.mxu1 %vm251_vm1, %v1350_v16 }
  0xe8   :  { %1130 = vmatmul.mubr.msk.f32.vlgmr.msra.gmra.mxu1 %vm251_vm1, %v1335_v13 }
  0xe9   :  { %1132 = vmatprep.mubr.msk.f32.mxu1 %vm251_vm1, %v1325_v11 }
  0xec   :  { %1133 = vmatmul.mubr.msk.f32.gmra.mxu1 %vm251_vm1, %v1315_v9 }
  0xed   :  { %1135 = vmatprep.mubr.msk.f32.mxu1 %vm251_vm1, %v1299_v6 }
  0xf0   :  { %1136 = vmatmul.mubr.msk.f32.gmra.mxu1 %vm251_vm1, %v1286_v3 }
  0xf1   :  { %1138 = vmatprep.mubr.msk.f32.mxu1 %vm251_vm1, %v1279_v1 }
  0xf4   :  { %1139 = vmatmul.mubr.msk.f32.gmra.mxu1 %vm251_vm1, %v1274_v0 }
  0xf5   :  { %1177 = vmatprep.mubr.msk.f32.mxu1 %vm64_vm0, %v988_v5  ;;  %v944_v5 = vld [vmem:[%s1594_s5] ss:$0 sm:$0xff] }
 0x198   :  { %v1115_v62 = vpop.f32.mrf.mxu1 }
 0x199   :  { %v348_v8 = vadd.f32 %v1115_v62, %v944_v5  ;;  %v807_v62 = vld [vmem:[%s1593_s7 + $0x8] sm:$0xff] }
 0x19a   :  { %v342_v63 = vpop.f32.mrf.mxu1 }
 0x19b   :  { %v343_v10 = vadd.f32 %v944_v5, %v342_v63 }
 0x19c   :  { %v1118_v0 = vpop.f32.mrf.mxu1 }
 0x19d   :  { %v358_v13 = vadd.f32 %v1118_v0, %v944_v5 }
 0x19e   :  { %v352_v1 = vpop.f32.mrf.mxu1 }
 0x19f   :  { %v353_v21 = vadd.f32 %v944_v5, %v352_v1  ;;  %v806_v1 = vld [vmem:[%s1593_s7] sm:$0xff] }
 0x1a0   :  { %v1121_v2 = vpop.f32.mrf.mxu1 }
 0x1a1   :  { %v368_v31 = vadd.f32 %v1121_v2, %v944_v5 }
 0x1a2   :  { %v362_v3 = vpop.f32.mrf.mxu1 }
 0x1a3   :  { %v363_v39 = vadd.f32 %v944_v5, %v362_v3 }
 0x1a4   :  { %v1124_v6 = vpop.f32.mrf.mxu1 }
 0x1a5   :  { %v378_v43 = vadd.f32 %v1124_v6, %v944_v5 }
 0x1a6   :  { %v372_v7 = vpop.f32.mrf.mxu1 }
 0x1a7   :  { %v373_v49 = vadd.f32 %v944_v5, %v372_v7 }
 0x1a8   :  { %v1131_v9 = vpop.f32.mrf.mxu1 }
 0x1a9   :  { %v513_v11 = vadd.f32 %v1131_v9, %v348_v8 }
 0x1aa   :  { %v473_v12 = vpop.f32.mrf.mxu1 }
 0x1ab   :  { %v521_v15 = vmax.f32 %v513_v11, 0.0  ;;  %v512_v16 = vadd.f32 %v473_v12, %v343_v10 }
 0x1ac   :  { %v1134_v17 = vpop.f32.mrf.mxu1 }
 0x1ad   :  { %530 = vst.msk [vmem:[#allocation2 + $0x8] sm:$0xff] %vm528_vm2, %v521_v15  ;;  %v520_v22 = vmax.f32 %v512_v16, 0.0  ;;  %v515_v29 = vadd.f32 %v1134_v17, %v358_v13 }
 0x1ae   :  { %v483_v30 = vpop.f32.mrf.mxu1 }
 0x1af   :  { %529 = vst.msk [vmem:[#allocation2] sm:$0xff] %vm528_vm2, %v520_v22  ;;  %v523_v34 = vmax.f32 %v515_v29, 0.0  ;;  %v514_v36 = vadd.f32 %v483_v30, %v353_v21 }
 0x1b0   :  { %v1137_v38 = vpop.f32.mrf.mxu1 }
 0x1b1   :  { %532 = vst.msk [vmem:[#allocation2 + $0x18] sm:$0xff] %vm528_vm2, %v523_v34  ;;  %v522_v40 = vmax.f32 %v514_v36, 0.0  ;;  %v517_v41 = vadd.f32 %v1137_v38, %v368_v31 }
 0x1b2   :  { %v493_v42 = vpop.f32.mrf.mxu1 }
 0x1b3   :  { %531 = vst.msk [vmem:[#allocation2 + $0x10] sm:$0xff] %vm528_vm2, %v522_v40  ;;  %v525_v45 = vmax.f32 %v517_v41, 0.0  ;;  %v516_v46 = vadd.f32 %v493_v42, %v363_v39 }
 0x1b4   :  { %v1140_v48 = vpop.f32.mrf.mxu1  ;;  %v538_v58 = vld [vmem:[#allocation2 + $0x8] sm:$0xff] }
 0x1b5   :  { %534 = vst.msk [vmem:[#allocation2 + $0x28] sm:$0xff] %vm528_vm2, %v525_v45  ;;  %v524_v50 = vmax.f32 %v516_v46, 0.0  ;;  %v519_v51 = vadd.f32 %v1140_v48, %v378_v43 }
 0x1b6   :  { %v503_v53 = vpop.f32.mrf.mxu1  ;;  %v537_v55 = vld [vmem:[#allocation2] sm:$0xff] }
 0x1b7   :  { %533 = vst.msk [vmem:[#allocation2 + $0x20] sm:$0xff] %vm528_vm2, %v524_v50  ;;  %v527_v56 = vmax.f32 %v519_v51, 0.0  ;;  %v518_v57 = vadd.f32 %v503_v53, %v373_v49  ;;  %1149 = vmatprep.mubr.msk.f32.mxu0 %vm528_vm2, %v537_v55 }
 0x1b8   :  { %1150 = vmatmul.mubr.msk.f32.vlgmr.msra.gmra.mxu0 %vm528_vm2, %v538_v58  ;;  %v540_v0 = vld [vmem:[#allocation2 + $0x18] sm:$0xff] }
 0x1b9   :  { %536 = vst.msk [vmem:[#allocation2 + $0x38] sm:$0xff] %vm528_vm2, %v527_v56  ;;  %v526_v60 = vmax.f32 %v518_v57, 0.0  ;;  %1190 = vmatpush3.msra.mxu0 %v1481_v61 }
 0x1ba   :  { %v539_v63 = vld [vmem:[#allocation2 + $0x10] sm:$0xff]  ;;  %1191 = vmatprep.subr.mxu0 %v808_v59 }
 0x1bb   :  { %535 = vst.msk [vmem:[#allocation2 + $0x30] sm:$0xff] %vm528_vm2, %v526_v60  ;;  %1152 = vmatprep.mubr.msk.f32.mxu0 %vm528_vm2, %v539_v63  ;;  %1192 = vmatpush3.msra.mxu0 %v808_v59 }
 0x1bc   :  { %1153 = vmatmul.mubr.msk.f32.gmra.mxu0 %vm528_vm2, %v540_v0  ;;  %1193 = vmatprep.subr.mxu0 %v807_v62  ;;  %v542_v3 = vld [vmem:[#allocation2 + $0x28] sm:$0xff] }
 0x1bd   :  { %1194 = vmatpush3.msra.mxu0 %v807_v62 }
 0x1be   :  { %v541_v2 = vld [vmem:[#allocation2 + $0x20] sm:$0xff]  ;;  %1195 = vmatprep.subr.mxu0 %v806_v1 }
 0x1bf   :  { %1155 = vmatprep.mubr.msk.f32.mxu0 %vm528_vm2, %v541_v2  ;;  %1196 = vmatpush3.msra.mxu0 %v806_v1 }
 0x1c0   :  { %1156 = vmatmul.mubr.msk.f32.gmra.mxu0 %vm528_vm2, %v542_v3  ;;  %v544_v6 = vld [vmem:[#allocation2 + $0x38] sm:$0xff] }
 0x1c2   :  { %v543_v5 = vld [vmem:[#allocation2 + $0x30] sm:$0xff] }
 0x1c3   :  { %1158 = vmatprep.mubr.msk.f32.mxu0 %vm528_vm2, %v543_v5 }
 0x1c4   :  { %1159 = vmatmul.mubr.msk.f32.gmra.mxu0 %vm528_vm2, %v544_v6 }
 0x1c5   :  { %1197 = vmatprep.mubr.msk.f32.mxu0 %vm528_vm2, %v537_v55 }
 0x1c8   :  { %1198 = vmatmul.mubr.msk.f32.vlgmr.msra.gmra.mxu0 %vm528_vm2, %v538_v58 }
 0x1c9   :  { %1200 = vmatprep.mubr.msk.f32.mxu0 %vm528_vm2, %v539_v63 }
 0x1cc   :  { %1201 = vmatmul.mubr.msk.f32.gmra.mxu0 %vm528_vm2, %v540_v0 }
 0x1cd   :  { %1203 = vmatprep.mubr.msk.f32.mxu0 %vm528_vm2, %v541_v2 }
 0x1d0   :  { %1204 = vmatmul.mubr.msk.f32.gmra.mxu0 %vm528_vm2, %v542_v3 }
 0x278   :  { %v1151_v7 = vpop.f32.mrf.mxu0 }
 0x27a   :  { %v639_v8 = vpop.f32.mrf.mxu0 }
 0x27c   :  { %v1154_v9 = vpop.f32.mrf.mxu0 }
 0x27e   :  { %v649_v10 = vpop.f32.mrf.mxu0 }
 0x280   :  { %v1157_v11 = vpop.f32.mrf.mxu0 }
 0x282   :  { %v659_v12 = vpop.f32.mrf.mxu0 }
 0x284   :  { %v1160_v13 = vpop.f32.mrf.mxu0 }
 0x285   :  { %1161 = vmatprep.subr.mxu1 %v1160_v13 }
 0x286   :  { %v669_v15 = vpop.f32.mrf.mxu0  ;;  %1162 = vmatpush3.msra.mxu1 %v1160_v13 }
 0x287   :  { %1163 = vmatprep.subr.mxu1 %v669_v15 }
 0x288   :  { %1164 = vmatpush3.msra.mxu1 %v669_v15  ;;  %v1199_v4 = vpop.f32.mrf.mxu0 }
 0x289   :  { %1165 = vmatprep.subr.mxu1 %v1157_v11 }
 0x28a   :  { %1166 = vmatpush3.msra.mxu1 %v1157_v11  ;;  %v876_v14 = vpop.f32.mrf.mxu0 }
 0x28b   :  { %1167 = vmatprep.subr.mxu1 %v659_v12 }
 0x28c   :  { %1168 = vmatpush3.msra.mxu1 %v659_v12 }
 0x28d   :  { %1169 = vmatprep.subr.mxu1 %v1154_v9 }
 0x28e   :  { %1170 = vmatpush3.msra.mxu1 %v1154_v9 }
 0x28f   :  { %1171 = vmatprep.subr.mxu1 %v649_v10 }
 0x290   :  { %1172 = vmatpush3.msra.mxu1 %v649_v10 }
 0x291   :  { %1173 = vmatprep.subr.mxu1 %v1151_v7 }
 0x292   :  { %1174 = vmatpush3.msra.mxu1 %v1151_v7 }
 0x293   :  { %1175 = vmatprep.subr.mxu1 %v639_v8 }
 0x294   :  { %1176 = vmatpush3.msra.mxu1 %v639_v8 }
 0x295   :  { %1178 = vmatmul.mubr.msk.f32.vlgmr.msra.gmra.mxu1 %vm64_vm0, %v989_v18  ;;  %1209 = vmatprep.subr.mxu1 %v1481_v61 }
 0x296   :  { %1213 = vmatpush3.msra.mxu1 %v1481_v61  ;;  %1180 = vmatprep.mubr.msk.f32.mxu1 %vm64_vm0, %v992_v19  ;;  %v977_v19 = vld [vmem:[%s1595_s8] ss:$0 sm:$0xff] }
 0x297   :  { %1210 = vmatprep.subr.mxu1 %v808_v59 }
 0x298   :  { %1214 = vmatpush3.msra.mxu1 %v808_v59 }
 0x299   :  { %1181 = vmatmul.mubr.msk.f32.gmra.mxu1 %vm64_vm0, %v993_v23  ;;  %1211 = vmatprep.subr.mxu1 %v807_v62  ;;  %v1202_v23 = vpop.f32.mrf.mxu0 }
 0x29a   :  { %1183 = vmatprep.mubr.msk.f32.mxu1 %vm64_vm0, %v996_v24  ;;  %1215 = vmatpush3.msra.mxu1 %v807_v62 }
 0x29b   :  { %1212 = vmatprep.subr.mxu1 %v806_v1  ;;  %v886_v17 = vpop.f32.mrf.mxu0 }
 0x29c   :  { %1216 = vmatpush3.msra.mxu1 %v806_v1 }
 0x29d   :  { %1184 = vmatmul.mubr.msk.f32.gmra.mxu1 %vm64_vm0, %v997_v26  ;;  %v1205_v34 = vpop.f32.mrf.mxu0 }
 0x29e   :  { %1186 = vmatprep.mubr.msk.f32.mxu1 %vm64_vm0, %v1000_v27 }
 0x29f   :  { %v896_v43 = vpop.f32.mrf.mxu0 }
 0x2a1   :  { %1187 = vmatmul.mubr.msk.f32.gmra.mxu1 %vm64_vm0, %v1001_v28 }
 0x2a2   :  { %1206 = vmatprep.mubr.msk.f32.mxu1 %vm528_vm2, %v543_v5 }
 0x2a5   :  { %1207 = vmatmul.mubr.msk.f32.vlgmr.msra.gmra.mxu1 %vm528_vm2, %v544_v6 }
 0x355   :  { %v1179_v18 = vpop.f32.mrf.mxu1 }
 0x356   :  { %v784_v20 = vmul.f32 %v1179_v18, %v1416_v35 }
 0x357   :  { %v744_v24 = vpop.f32.mrf.mxu1 }
 0x358   :  { %v799_v26 = vadd.f32 %v977_v19, %v784_v20  ;;  %v783_v25 = vmul.f32 %v744_v24, %v1412_v32 }
 0x359   :  { %v1182_v27 = vpop.f32.mrf.mxu1 }
 0x35a   :  { %v916_v28 = vadd.f32 %v1199_v4, %v799_v26  ;;  %v798_v61 = vadd.f32 %v977_v19, %v783_v25  ;;  %v786_v16 = vmul.f32 %v1182_v27, %v1418_v37 }
 0x35b   :  { %v754_v21 = vpop.f32.mrf.mxu1 }
 0x35c   :  { %925 = vst.msk [vmem:[%s1596_s9 + $0x8] sm:$0xff] %vm923_vm3, %v916_v28  ;;  %v915_v22 = vadd.f32 %v876_v14, %v798_v61  ;;  %v801_v35 = vadd.f32 %v977_v19, %v786_v16  ;;  %v785_v29 = vmul.f32 %v754_v21, %v1414_v33 }
 0x35d   :  { %v1185_v30 = vpop.f32.mrf.mxu1 }
 0x35e   :  { %924 = vst.msk [vmem:[%s1596_s9] sm:$0xff] %vm923_vm3, %v915_v22  ;;  %v918_v32 = vadd.f32 %v1202_v23, %v801_v35  ;;  %v800_v31 = vadd.f32 %v977_v19, %v785_v29  ;;  %v788_v37 = vmul.f32 %v1185_v30, %v1431_v47 }
 0x35f   :  { %v764_v36 = vpop.f32.mrf.mxu1 }
 0x360   :  { %927 = vst.msk [vmem:[%s1596_s9 + $0x18] sm:$0xff] %vm923_vm3, %v918_v32  ;;  %v917_v38 = vadd.f32 %v886_v17, %v800_v31  ;;  %v803_v39 = vadd.f32 %v977_v19, %v788_v37  ;;  %v787_v33 = vmul.f32 %v764_v36, %v1428_v44 }
 0x361   :  { %v1188_v40 = vpop.f32.mrf.mxu1 }
 0x362   :  { %926 = vst.msk [vmem:[%s1596_s9 + $0x10] sm:$0xff] %vm923_vm3, %v917_v38  ;;  %v920_v41 = vadd.f32 %v1205_v34, %v803_v39  ;;  %v802_v42 = vadd.f32 %v977_v19, %v787_v33  ;;  %v790_v47 = vmul.f32 %v1188_v40, %v1441_v54 }
 0x363   :  { %v774_v45 = vpop.f32.mrf.mxu1 }
 0x364   :  { %929 = vst.msk [vmem:[%s1596_s9 + $0x28] sm:$0xff] %vm923_vm3, %v920_v41  ;;  %v919_v46 = vadd.f32 %v896_v43, %v802_v42  ;;  %v789_v44 = vmul.f32 %v774_v45, %v1438_v52  ;;  %v805_v48 = vadd.f32 %v977_v19, %v790_v47 }
 0x365   :  { %v1208_v49 = vpop.f32.mrf.mxu1 }
 0x366   :  { %928 = vst.msk [vmem:[%s1596_s9 + $0x20] sm:$0xff] %vm923_vm3, %v919_v46  ;;  %v922_v50 = vadd.f32 %v1208_v49, %v805_v48  ;;  %v804_v51 = vadd.f32 %v977_v19, %v789_v44 }
 0x367   :  { %v906_v54 = vpop.f32.mrf.mxu1 }
 0x368   :  { %931 = vst.msk [vmem:[%s1596_s9 + $0x38] sm:$0xff] %vm923_vm3, %v922_v50  ;;  %v921_v53 = vadd.f32 %v906_v54, %v804_v51 }
 0x36a   :  { %930 = vst.msk [vmem:[%s1596_s9 + $0x30] sm:$0xff] %vm923_vm3, %v921_v53 }

</bundles_post_ra>
